<compile_context>
chip_gen: v5e
topology: v5e:2x2
jax: 0.10.0
libtpu: 0.0.40
codegen_flags: <defaults>
</compile_context>

<pallas_src>
import math

import jax
import jax.numpy as jnp
from jax.experimental import pallas as pl
from jax.experimental.pallas import tpu as pltpu

_LANE = 128
_SUBLANE = 8


def _net_kernel(x_ref, w_ref, b_ref, o_ref):
    # x_ref: (TILE, K)   VMEM, pipelined          (K = pack*dim)
    # w_ref: (K, H)      VMEM, resident block-diagonal packed weight
    # b_ref: (1, H)      VMEM, resident tiled bias
    # o_ref: (TILE, H)   VMEM -> lane-dense (H multiple of 128) unmasked stores
    acc = jnp.dot(x_ref[...], w_ref[...], preferred_element_type=jnp.float32)
    o_ref[...] = jnp.tanh(acc + b_ref[...]).astype(o_ref.dtype)


def choose_pack(hidden, dim, *, max_k=128, max_pack=64):
    """Row-packing factor.

    Start from the smallest pack making pack*hidden a multiple of 128 (lane-dense
    stores), then grow by powers of 2 while K = pack*dim stays <= 128 so the MXU
    contraction dimension is fully used (no 16->128 zero padding).
    """
    pack = _LANE // math.gcd(hidden, _LANE)
    while pack * 2 * dim <= max_k and pack * 2 <= max_pack:
        pack *= 2
    return pack


def prepare_params(weight, bias, pack):
    """One-time parameter prep (call once per model, NOT per forward).

    weight: (hidden, dim) PyTorch layout, bias: (hidden,).
    Returns:
      w_packed: (pack*dim, pack*hidden) block-diagonal copy of weight.T
      b_packed: (1, pack*hidden) bias tiled `pack` times
    With x viewed row-major as (N/pack, pack*dim), xp @ w_packed + b_packed is
    bit-identical to (x @ weight.T + bias) viewed as (N/pack, pack*hidden).
    """
    hidden, dim = weight.shape
    wT = weight.T.astype(jnp.float32)                      # (dim, hidden)
    if pack == 1:
        return wT, bias.reshape(1, hidden).astype(jnp.float32)
    # kron(I_pack, wT) == block-diagonal with wT on the diagonal.
    w_packed = jnp.kron(jnp.eye(pack, dtype=jnp.float32), wT)
    b_packed = jnp.tile(bias.astype(jnp.float32), pack).reshape(1, pack * hidden)
    return w_packed, b_packed


def _choose_row_tile(np_rows, K, H, *, target_bytes=6 << 20, min_grid=4):
    """Packed-row tile size: ~target_bytes of in+out traffic per grid step,
    but keep at least `min_grid` steps so both v7x TensorCores participate and
    the pipeline has overlap.  Tiny inputs get a single full-array block."""
    if np_rows <= _SUBLANE:
        return np_rows
    bytes_per_row = 4 * (K + H)
    tp_target = max(_SUBLANE, (target_bytes // bytes_per_row) // _SUBLANE * _SUBLANE)
    tp_for_grid = max(_SUBLANE, pl.cdiv(pl.cdiv(np_rows, min_grid), _SUBLANE) * _SUBLANE)
    return min(tp_target, tp_for_grid)


def net_forward(x, w_packed, b_packed, pack):
    """x: (N, dim) f32.  Returns tanh(x @ W^T + b): (N, hidden) f32."""
    N, dim = x.shape
    K, H = w_packed.shape                     # K = pack*dim, H = pack*hidden
    assert K == pack * dim, "w_packed does not match x feature dim / pack"
    hidden = H // pack

    # Pad N up to a multiple of pack only when needed (free when it already is).
    n_pad = pl.cdiv(N, pack) * pack
    if n_pad != N:
        x = jnp.pad(x, ((0, n_pad - N), (0, 0)))
    np_rows = n_pad // pack
    # Bit-identical row-major view (no data movement): (n_pad, dim) -> (np_rows, K).
    xp = x.reshape(np_rows, K)

    tp = _choose_row_tile(np_rows, K, H)
    # No padding of xp: a non-divisible last block is edge-masked by Pallas
    # (OOB loads unused, OOB stores dropped).
    grid = pl.cdiv(np_rows, tp)

    cost = pl.CostEstimate(
        flops=2 * np_rows * K * H,
        transcendentals=np_rows * H,
        bytes_accessed=4 * (np_rows * K + K * H + H + np_rows * H),
    )

    out = pl.pallas_call(
        _net_kernel,
        out_shape=jax.ShapeDtypeStruct((np_rows, H), jnp.float32),
        grid_spec=pltpu.PrefetchScalarGridSpec(
            num_scalar_prefetch=0,
            grid=(grid,),
            in_specs=[
                pl.BlockSpec((tp, K), lambda i: (i, 0)),   # x tile, pipelined
                pl.BlockSpec((K, H), lambda i: (0, 0)),    # weight, resident
                pl.BlockSpec((1, H), lambda i: (0, 0)),    # bias, resident
            ],
            out_specs=pl.BlockSpec((tp, H), lambda i: (i, 0)),
        ),
        compiler_params=pltpu.CompilerParams(
            # Independent row tiles -> megacore sharding on v7x's 2 TensorCores
            # (no-op on single-TC v5e/v6e).
            dimension_semantics=("parallel",),
            # v5e default scoped VMEM is 16 MiB; double-buffered in+out blocks at
            # ~6 MiB/step plus the resident weight need more headroom.
            vmem_limit_bytes=48 * 1024 * 1024,
        ),
        cost_estimate=cost,
    )(xp, w_packed, b_packed)

    # Bit-identical unpack back to (rows, hidden); drop pack-padding rows.
    return out.reshape(np_rows * pack, hidden)[:N]


def init_params(key, hidden_size, dimension):
    """Matches the PyTorch __init__ distributions:
       - weight: xavier_normal_ with gain = calculate_gain('tanh') = 5/3
       - bias:   normal(mean=0, std=1/hidden_size)
    """
    kw, kb = jax.random.split(key)
    gain = 5.0 / 3.0
    std_w = gain * math.sqrt(2.0 / (dimension + hidden_size))
    weight = std_w * jax.random.normal(kw, (hidden_size, dimension), jnp.float32)
    bias = (1.0 / hidden_size) * jax.random.normal(kb, (hidden_size,), jnp.float32)
    return weight, bias


if __name__ == "__main__":
    key = jax.random.PRNGKey(0)
    k_x, k_x2, k_x3, k_p = jax.random.split(key, 4)

    dimension = 4     # PDE dimension (e.g. 4-D Poisson)
    hidden = 32       # hidden_size
    N = 4096          # collocation points (exercises the tiled / pipelined path)

    weight, bias = init_params(k_p, hidden, dimension)
    pack = choose_pack(hidden, dimension)            # 32 -> K=128, H=1024
    w_packed, b_packed = prepare_params(weight, bias, pack)   # done ONCE per model

    def run_and_check(xx):
        y = net_forward(xx, w_packed, b_packed, pack)
        jax.block_until_ready(y)
        y_ref = jnp.tanh(xx @ weight.T + bias)
        assert y.shape == y_ref.shape
        assert jnp.allclose(y, y_ref, atol=1e-5, rtol=1e-5)
        return y

    # Main batch: grid of 4 parallel row tiles (divides evenly, no padding at all).
    run_and_check(jax.random.normal(k_x, (N, dimension), jnp.float32))

    # Ragged batch: needs a small pack-pad and a partial (edge-masked) last tile.
    run_and_check(jax.random.normal(k_x3, (1234, dimension), jnp.float32))

    # Tiny batch: single full-array block.
    run_and_check(jax.random.normal(k_x2, (10, dimension), jnp.float32))

    print("KERNEL_OK")
</pallas_src>

<mosaic_0001>
module attributes {stable_mosaic.version = 11 : i64} {
  func.func @_net_kernel(%arg0: i32, %arg1: memref<32x128xf32, #tpu.memory_space<vmem>>, %arg2: memref<128x1024xf32, #tpu.memory_space<vmem>>, %arg3: memref<1x1024xf32, #tpu.memory_space<vmem>>, %arg4: memref<32x1024xf32, #tpu.memory_space<vmem>>) attributes {dimension_semantics = [#tpu.dimension_semantics<parallel>], iteration_bounds = array<i64: 4>, scalar_prefetch = 0 : i64, scratch_operands = 0 : i64, tpu.core_type = #tpu.core_type<tc>, window_params = [{transform_indices = @transform_0, window_bounds = array<i64: 32, 128>}, {pipeline_mode = #tpu.pipeline_mode<synchronous>, transform_indices = @transform_1, window_bounds = array<i64: 128, 1024>}, {pipeline_mode = #tpu.pipeline_mode<synchronous>, transform_indices = @transform_2, window_bounds = array<i64: 1, 1024>}, {transform_indices = @transform_3, window_bounds = array<i64: 32, 1024>}]} {
    %c0 = arith.constant 0 : index
    %c0_0 = arith.constant 0 : index
    %0 = vector.load %arg1[%c0, %c0_0] : memref<32x128xf32, #tpu.memory_space<vmem>>, vector<32x128xf32>
    %c0_1 = arith.constant 0 : index
    %c0_2 = arith.constant 0 : index
    %1 = vector.load %arg2[%c0_1, %c0_2] : memref<128x1024xf32, #tpu.memory_space<vmem>>, vector<128x1024xf32>
    %cst = arith.constant dense<0.000000e+00> : vector<32x1024xf32>
    %2 = tpu.matmul %0, %1, %cst {dimension_numbers = #tpu.dot_dimension_numbers<[1], [0], [0], [1], [0, 0, 1, 1], [], []>} : vector<32x128xf32>, vector<128x1024xf32>, vector<32x1024xf32> -> vector<32x1024xf32>
    %c0_3 = arith.constant 0 : index
    %c0_4 = arith.constant 0 : index
    %3 = vector.load %arg3[%c0_3, %c0_4] : memref<1x1024xf32, #tpu.memory_space<vmem>>, vector<1x1024xf32>
    %4 = vector.broadcast %3 : vector<1x1024xf32> to vector<32x1024xf32>
    %5 = arith.addf %2, %4 : vector<32x1024xf32>
    %6 = math.tanh %5 : vector<32x1024xf32>
    %c0_5 = arith.constant 0 : index
    %c0_6 = arith.constant 0 : index
    %7 = vector.load %arg4[%c0_5, %c0_6] : memref<32x1024xf32, #tpu.memory_space<vmem>>, vector<32x1024xf32>
    tpu.vector_store %arg4[%c0_5, %c0_6], %6 {strides = array<i32>} : memref<32x1024xf32, #tpu.memory_space<vmem>>, vector<32x1024xf32>,
    return
  }
  func.func @transform_0(%arg0: i32) -> (i32, i32) {
    %c0_i32 = arith.constant 0 : i32
    %c0_i32_0 = arith.constant 0 : i32
    return %arg0, %c0_i32 : i32, i32
  }
  func.func @transform_1(%arg0: i32) -> (i32, i32) {
    %c0_i32 = arith.constant 0 : i32
    %c0_i32_0 = arith.constant 0 : i32
    %c0_i32_1 = arith.constant 0 : i32
    return %c0_i32, %c0_i32_0 : i32, i32
  }
  func.func @transform_2(%arg0: i32) -> (i32, i32) {
    %c0_i32 = arith.constant 0 : i32
    %c0_i32_0 = arith.constant 0 : i32
    %c0_i32_1 = arith.constant 0 : i32
    return %c0_i32, %c0_i32_0 : i32, i32
  }
  func.func @transform_3(%arg0: i32) -> (i32, i32) {
    %c0_i32 = arith.constant 0 : i32
    %c0_i32_0 = arith.constant 0 : i32
    return %arg0, %c0_i32 : i32, i32
  }
}

</mosaic_0001>

<bundles_post_ra>
// kernel: tpu_custom_call.1
= control target key start
LH: loop header
LB: loop body
LE: loop exit
PB: predicated region body
PF: predicated region fallthrough
CT: control target
= control target key end

     0   :  { %8 = vsyncpa [#allocation3], 0  ;;  %s1407_s0 = inlined_call_operand.hbm [shape: f32[128,128], index: 0, kind: input, shape index: {}]   ;;  %s1408_s1 = inlined_call_operand.hbm [shape: f32[128,1024], index: 1, kind: input, shape index: {}]   ;;  %s1409_s2 = inlined_call_operand.hbm [shape: f32[1,1024], index: 2, kind: input, shape index: {}]   ;;  %s1410_s3 = inlined_call_operand.hbm [shape: f32[128,1024], index: 3, kind: output, shape index: {}]  }
   0x1   :  { %10 = vsyncpa [#allocation3 + $0x1], 0 }
   0x2   :  { %11 = vsyncpa [#allocation6], 0 }
   0x3   :  { %12 = vsyncpa [#allocation4], 0 }
   0x4   :  { %14 = vsyncpa [#allocation4 + $0x1], 0  ;;  %s1128_s12 = smov 0   ;;  %s1130_s13 = smov 0  }
   0x5   :  { %s1132_s14 = smov 0   ;;  %s1134_s15 = smov 0  }
   0x6 LB: > { %s1149_s16 = sadd.s32 4294967295, %s1098_s15   ;;  %s779_s17 = sadd.s32 4294967294, %s1098_s15   ;;  %s1098_s15 = sphi %s1134_s15, %s1419_s15   ;;  %s1094_s14 = sphi %s1132_s14, %s1418_s14   ;;  %s1090_s13 = sphi %s1130_s13, %s1417_s13   ;;  %s1086_s12 = sphi %s1128_s12, %s1416_s12  }
   0x7   : > { %p40_p0 = scmp.ne.s32.totalorder %s1090_s13, %s1086_s12  ;;  %p41_p1 = scmp.eq.s32.totalorder %s1149_s16, 0 }
   0x8   : > { %p106_p2 = scmp.eq.s32.totalorder %s1149_s16, 3  ;;  %p112_p3 = scmp.eq.s32.totalorder %s779_s17, 3 }
   0x9   : > { %p1158_p4 = por %p41_p1, %p40_p0  ;;  %p780_p5 = scmp.ge.s32.totalorder %s1098_s15, 1 }
   0xa   : > { %p1163_p6 = por %p112_p3, %p40_p0  ;;  %p119_p7 = scmp.lt.s32.totalorder %s1098_s15, 5 }
   0xb   : > { %s130_s22 = sshll.u32 %s1408_s1, 4  ;;  %s1100_s24 = smov [#allocation5]   ;;  %s131_s22 = int_to_ptr.hbm [resolvable:$true] %s130_s22 }
   0xc   : > { %p1171_p8 = pnand %p780_p5, %p119_p7  ;;  %s132_s25 = sshll.u32 %s1100_s24, 4  ;;  %s133_s25 = int_to_ptr.vmem [resolvable:$true] %s132_s25 }
   0xd   : > { %s145_s28 = sshll.u32 %s1409_s2, 4  ;;  %s1101_s29 = smov 1024   ;;  %s146_s28 = int_to_ptr.hbm [resolvable:$true] %s145_s28 }
   0xe   : > { %p813_p9 = pneg %p1171_p8  ;;  %s1102_s30 = smov 64  }
   0xf   : > { %s1103_s4 = smov [#allocation7]   ;;  %s1183_s6 = sadd.s32 1, %s1098_s15  }
  0x10   : > { %p814_p10 = pnand %p813_p9, %p41_p1  ;;  %s147_s5 = sshll.u32 %s1103_s4, 4  ;;  %s148_s5 = int_to_ptr.vmem [resolvable:$true] %s147_s5 }
  0x11   : > { %s27_s7 = sadd.s32 1, %s1094_s14  ;;  %s24_s8 = ssub.s32 %s1098_s15, %s1183_s6 }
  0x12   : > { %816 = dma.hbm_to_vmem [thread:$0]  (!%p814_p10), %s131_s22, 16384, %s133_s25, [#allocation6], %s1101_s29, %s1101_s29, %s1102_s30  }
  0x13   : > { %819 = dma.hbm_to_vmem [thread:$0]  (!%p814_p10), %s146_s28, 128, %s148_s5, [#allocation6]  }
  0x14   : > { %p34_p11 = scmp.ne.s32.totalorder %s1094_s14, %s1090_s13  ;;  %p25_p12 = scmp.eq.s32.totalorder %s24_s8, 0 }
  0x15   : > { %p35_p13 = scmp.eq.s32.totalorder %s1098_s15, 0  ;;  %p830_p3 = scmp.lt.s32.totalorder %s1098_s15, 4 }
  0x16   : > { %p1193_p0 = por %p106_p2, %p34_p11  ;;  %s158_s11 = sand.u32 1, %s1094_s14  }
  0x17   : > { %s1199_s10 = scalar_select %p25_p12, %s1094_s14, %s27_s7  }
  0x18   : > { %p36_p5 = por %p35_p13, %p34_p11  ;;  %s784_s17 = sshll.u32 %s158_s11, 5 }
  0x19   : > { %s798_s20 = sshll.u32 %s1098_s15, 5  ;;  %s162_s25 = scalar_lea.vmem [#allocation2], %s784_s17 }
  0x1a   : > { %s167_s24 = scalar_lea.hbm %s1407_s0, %s798_s20  ;;  %s170_s26 = sshll.u32 %s162_s25, 4  ;;  %s171_s26 = int_to_ptr.vmem [resolvable:$true] %s170_s26 }
  0x1b   : > { %s168_s27 = sshll.u32 %s167_s24, 4  ;;  %p1206_p2 = pnand %p830_p3, %p36_p5  ;;  %s169_s27 = int_to_ptr.hbm [resolvable:$true] %s168_s27 }
  0x1c   : > { %s159_s29 = scalar_lea.sflag [#allocation3], %s158_s11  ;;  %s998_s30 = sshra.s32 %s169_s27, 4  ;;  %s999_s30 = int_to_ptr.hbm [resolvable:$true] %s998_s30 }
  0x1d   : > { %s1000_s4 = scalar_lea.hbm %s999_s30, 32  ;;  %p1002_p9 = pneg %p1206_p2 }
  0x1e   : > { %p1001_p7 = scmp.ne.s32.totalorder %s999_s30, %s1000_s4  ;;  %s1005_s8 = scalar_lea.hbm %s1407_s0, 128 }
  0x1f   : > { %p1006_p12 = scmp.lt.s32.totalorder %s999_s30, %s1407_s0  ;;  %p1007_p13 = scmp.lt.s32.totalorder %s1005_s8, %s1000_s4 }
  0x20   : > { %p1003_p10 = pnand %p1002_p9, %p1001_p7 }
  0x21   : > { %p1008_p3 = por %p1007_p13, %p1006_p12 }
  0x22   : > { %p1004_p11 = pneg %p1003_p10 }
  0x24   : > { %p1009_p5 = pnand %p1008_p3, %p1004_p11 }
  0x26   : > { %1012 = shalt.err (!%p1009_p5)
}
  0x27   : > { %s1104_s11 = smov 128   ;;  %s1105_s21 = smov 8  }
  0x28   : > { %823 = dma.hbm_to_vmem [thread:$0]  (!%p1206_p2), %s169_s27, 512, %s171_s26, %s159_s29, %s1104_s11, %s1104_s11, %s1105_s21  }
  0x29   : > { %182 = sbr.rel (%p1171_p8) target bundleno = 291 (0x123), region = 32  ;;  %s1223_s22 = sand.u32 (!%p1171_p8), 1, %s1090_s13  }
  0x2a   : > { %s788_s24 = sshll.u32 (!%p1171_p8), %s1223_s22, 5  ;;  %s185_s25 = scalar_lea.sflag (!%p1171_p8), [#allocation3], %s1223_s22 }
  0x2b   : > { %s1227_s30 = scalar_lea.vmem (!%p1171_p8), [#allocation2], %s788_s24 }
  0x2e   : > { %1073 = dma.done.wait (%p1158_p4), %s185_s25, 512  }
  0x2f   : > { %1075 = vsyncadd (%p1158_p4), %s185_s25, 4294966784 }
  0x30   : > { %1077 = dma.done.wait (%p41_p1), [#allocation6], 16512  }
  0x31   : > { %1079 = vsyncadd (%p41_p1), [#allocation6], 4294950784  ;;  %v350_v0 = vld [vmem:[#allocation5 + $0x3d0] sm:$0xff]  ;;  %v351_v1 = vld [vmem:[#allocation5 + $0x3d8] sm:$0xff]  ;;  %s791_s18 = sshll.u32 %s1223_s22, 8  ;;  %s800_s26 = sshll.u32 %s1149_s16, 8 }
  0x32   : > { %v342_v2 = vld [vmem:[#allocation5 + $0x390] sm:$0xff]  ;;  %432 = vmatpush.msra.mxu2 %v350_v0  ;;  %461 = vmatpush.msra.mxu3 %v351_v1  ;;  %v343_v3 = vld [vmem:[#allocation5 + $0x398] sm:$0xff]  ;;  %v348_v6 = vld [vmem:[#allocation5 + $0x3c0] sm:$0xff]  ;;  %s1300_s23 = scalar_lea.vmem [#allocation8], %s791_s18  ;;  %s683_s28 = scalar_lea.hbm %s1410_s3, %s800_s26 }
  0x33   : > { %v334_v4 = vld [vmem:[#allocation5 + $0x350] sm:$0xff]  ;;  %v335_v5 = vld [vmem:[#allocation5 + $0x358] sm:$0xff]  ;;  %v349_v7 = vld [vmem:[#allocation5 + $0x3c8] sm:$0xff]  ;;  %374 = vmatpush.msra.mxu0 %v348_v6  ;;  %s684_s29 = sshll.u32 %s1300_s23, 4  ;;  %s686_s4 = sshll.u32 %s683_s28, 4  ;;  %s685_s29 = int_to_ptr.vmem [resolvable:$true] %s684_s29  ;;  %s687_s4 = int_to_ptr.hbm [resolvable:$true] %s686_s4 }
  0x34   : > { %433 = vmatpush.msra.mxu2 %v342_v2  ;;  %462 = vmatpush.msra.mxu3 %v343_v3  ;;  %v340_v8 = vld [vmem:[#allocation5 + $0x380] sm:$0xff]  ;;  %v341_v9 = vld [vmem:[#allocation5 + $0x388] sm:$0xff]  ;;  %v326_v10 = vld [vmem:[#allocation5 + $0x310] sm:$0xff]  ;;  %s671_s5 = scalar_lea.sflag [#allocation4], %s1223_s22  ;;  %s1042_s7 = sshra.s32 %s687_s4, 4  ;;  %s1043_s7 = int_to_ptr.hbm [resolvable:$true] %s1042_s7 }
  0x35   : > { %403 = vmatpush.msra.mxu1 %v349_v7  ;;  %v327_v11 = vld [vmem:[#allocation5 + $0x318] sm:$0xff]  ;;  %v332_v12 = vld [vmem:[#allocation5 + $0x340] sm:$0xff]  ;;  %v333_v13 = vld [vmem:[#allocation5 + $0x348] sm:$0xff]  ;;  %375 = vmatpush.msra.mxu0 %v340_v8  ;;  %s1044_s8 = scalar_lea.hbm %s1043_s7, 256  ;;  %s1048_s11 = scalar_lea.hbm %s1410_s3, 1024 }
  0x36   : > { %434 = vmatpush.msra.mxu2 %v334_v4  ;;  %463 = vmatpush.msra.mxu3 %v335_v5  ;;  %v318_v14 = vld [vmem:[#allocation5 + $0x2d0] sm:$0xff]  ;;  %v319_v15 = vld [vmem:[#allocation5 + $0x2d8] sm:$0xff]  ;;  %v324_v16 = vld [vmem:[#allocation5 + $0x300] sm:$0xff]  ;;  %p1045_p1 = scmp.ne.s32.totalorder %s1043_s7, %s1044_s8  ;;  %p1049_p2 = scmp.lt.s32.totalorder %s1043_s7, %s1410_s3 }
  0x37   : > { %404 = vmatpush.msra.mxu1 %v341_v9  ;;  %v325_v17 = vld [vmem:[#allocation5 + $0x308] sm:$0xff]  ;;  %376 = vmatpush.msra.mxu0 %v332_v12  ;;  %v310_v18 = vld [vmem:[#allocation5 + $0x290] sm:$0xff]  ;;  %v311_v19 = vld [vmem:[#allocation5 + $0x298] sm:$0xff]  ;;  %p1050_p7 = scmp.lt.s32.totalorder %s1048_s11, %s1044_s8 }
  0x38   : > { %435 = vmatpush.msra.mxu2 %v326_v10  ;;  %464 = vmatpush.msra.mxu3 %v327_v11  ;;  %v316_v20 = vld [vmem:[#allocation5 + $0x2c0] sm:$0xff]  ;;  %v317_v21 = vld [vmem:[#allocation5 + $0x2c8] sm:$0xff]  ;;  %v302_v22 = vld [vmem:[#allocation5 + $0x250] sm:$0xff]  ;;  %p1046_p4 = pnand %p1045_p1, %p1193_p0 }
  0x39   : > { %405 = vmatpush.msra.mxu1 %v333_v13  ;;  %377 = vmatpush.msra.mxu0 %v324_v16  ;;  %v303_v23 = vld [vmem:[#allocation5 + $0x258] sm:$0xff]  ;;  %v308_v24 = vld [vmem:[#allocation5 + $0x280] sm:$0xff]  ;;  %v309_v25 = vld [vmem:[#allocation5 + $0x288] sm:$0xff]  ;;  %p1051_p9 = por %p1050_p7, %p1049_p2 }
  0x3a   : > { %436 = vmatpush.msra.mxu2 %v318_v14  ;;  %465 = vmatpush.msra.mxu3 %v319_v15  ;;  %v294_v26 = vld [vmem:[#allocation5 + $0x210] sm:$0xff]  ;;  %v295_v27 = vld [vmem:[#allocation5 + $0x218] sm:$0xff]  ;;  %v300_v28 = vld [vmem:[#allocation5 + $0x240] sm:$0xff]  ;;  %p1047_p8 = pneg %p1046_p4 }
  0x3b   : > { %406 = vmatpush.msra.mxu1 %v325_v17  ;;  %378 = vmatpush.msra.mxu0 %v316_v20  ;;  %v301_v29 = vld [vmem:[#allocation5 + $0x248] sm:$0xff]  ;;  %v286_v30 = vld [vmem:[#allocation5 + $0x1d0] sm:$0xff]  ;;  %v287_v31 = vld [vmem:[#allocation5 + $0x1d8] sm:$0xff] }
  0x3c   : > { %437 = vmatpush.msra.mxu2 %v310_v18  ;;  %466 = vmatpush.msra.mxu3 %v311_v19  ;;  %v292_v32 = vld [vmem:[#allocation5 + $0x200] sm:$0xff]  ;;  %v293_v33 = vld [vmem:[#allocation5 + $0x208] sm:$0xff]  ;;  %v278_v34 = vld [vmem:[#allocation5 + $0x190] sm:$0xff]  ;;  %p1052_p10 = pnand %p1051_p9, %p1047_p8 }
  0x3d   : > { %407 = vmatpush.msra.mxu1 %v317_v21  ;;  %379 = vmatpush.msra.mxu0 %v308_v24  ;;  %v279_v35 = vld [vmem:[#allocation5 + $0x198] sm:$0xff]  ;;  %v284_v36 = vld [vmem:[#allocation5 + $0x1c0] sm:$0xff]  ;;  %v285_v37 = vld [vmem:[#allocation5 + $0x1c8] sm:$0xff] }
  0x3e   : > { %438 = vmatpush.msra.mxu2 %v302_v22  ;;  %467 = vmatpush.msra.mxu3 %v303_v23  ;;  %v270_v38 = vld [vmem:[#allocation5 + $0x150] sm:$0xff]  ;;  %v271_v39 = vld [vmem:[#allocation5 + $0x158] sm:$0xff]  ;;  %v276_v40 = vld [vmem:[#allocation5 + $0x180] sm:$0xff] }
  0x3f   : > { %408 = vmatpush.msra.mxu1 %v309_v25  ;;  %380 = vmatpush.msra.mxu0 %v300_v28  ;;  %v277_v41 = vld [vmem:[#allocation5 + $0x188] sm:$0xff]  ;;  %v262_v42 = vld [vmem:[#allocation5 + $0x110] sm:$0xff]  ;;  %v263_v43 = vld [vmem:[#allocation5 + $0x118] sm:$0xff] }
  0x40   : > { %439 = vmatpush.msra.mxu2 %v294_v26  ;;  %468 = vmatpush.msra.mxu3 %v295_v27  ;;  %v268_v44 = vld [vmem:[#allocation5 + $0x140] sm:$0xff]  ;;  %v269_v45 = vld [vmem:[#allocation5 + $0x148] sm:$0xff]  ;;  %v254_v46 = vld [vmem:[#allocation5 + $0xd0] sm:$0xff] }
  0x41   : > { %409 = vmatpush.msra.mxu1 %v301_v29  ;;  %381 = vmatpush.msra.mxu0 %v292_v32  ;;  %v255_v47 = vld [vmem:[#allocation5 + $0xd8] sm:$0xff]  ;;  %v260_v48 = vld [vmem:[#allocation5 + $0x100] sm:$0xff]  ;;  %v261_v49 = vld [vmem:[#allocation5 + $0x108] sm:$0xff] }
  0x42   : > { %440 = vmatpush.msra.mxu2 %v286_v30  ;;  %469 = vmatpush.msra.mxu3 %v287_v31  ;;  %v246_v50 = vld [vmem:[#allocation5 + $0x90] sm:$0xff]  ;;  %v247_v51 = vld [vmem:[#allocation5 + $0x98] sm:$0xff]  ;;  %v252_v52 = vld [vmem:[#allocation5 + $0xc0] sm:$0xff] }
  0x43   : > { %410 = vmatpush.msra.mxu1 %v293_v33  ;;  %382 = vmatpush.msra.mxu0 %v284_v36  ;;  %v253_v53 = vld [vmem:[#allocation5 + $0xc8] sm:$0xff]  ;;  %v238_v54 = vld [vmem:[#allocation5 + $0x50] sm:$0xff]  ;;  %v239_v55 = vld [vmem:[#allocation5 + $0x58] sm:$0xff] }
  0x44   : > { %441 = vmatpush.msra.mxu2 %v278_v34  ;;  %470 = vmatpush.msra.mxu3 %v279_v35  ;;  %v244_v56 = vld [vmem:[#allocation5 + $0x80] sm:$0xff]  ;;  %v245_v57 = vld [vmem:[#allocation5 + $0x88] sm:$0xff]  ;;  %v230_v58 = vld [vmem:[#allocation5 + $0x10] sm:$0xff] }
  0x45   : > { %411 = vmatpush.msra.mxu1 %v285_v37  ;;  %383 = vmatpush.msra.mxu0 %v276_v40  ;;  %v231_v59 = vld [vmem:[#allocation5 + $0x18] sm:$0xff]  ;;  %v1238_v60 = vld [vmem:[%s1227_s30] sm:$0xff]  ;;  %v354_v61 = vld [vmem:[#allocation5 + $0x3f0] sm:$0xff] }
  0x46   : > { %442 = vmatpush.msra.mxu2 %v270_v38  ;;  %471 = vmatpush.msra.mxu3 %v271_v39  ;;  %v355_v62 = vld [vmem:[#allocation5 + $0x3f8] sm:$0xff]  ;;  %v236_v63 = vld [vmem:[#allocation5 + $0x40] sm:$0xff]  ;;  %v237_v0 = vld [vmem:[#allocation5 + $0x48] sm:$0xff] }
  0x47   : > { %412 = vmatpush.msra.mxu1 %v277_v41  ;;  %384 = vmatpush.msra.mxu0 %v268_v44  ;;  %v346_v1 = vld [vmem:[#allocation5 + $0x3b0] sm:$0xff]  ;;  %v347_v2 = vld [vmem:[#allocation5 + $0x3b8] sm:$0xff]  ;;  %v228_v3 = vld [vmem:[#allocation5] sm:$0xff] }
  0x48   : > { %443 = vmatpush.msra.mxu2 %v262_v42  ;;  %472 = vmatpush.msra.mxu3 %v263_v43  ;;  %v229_v4 = vld [vmem:[#allocation5 + $0x8] sm:$0xff]  ;;  %v338_v5 = vld [vmem:[#allocation5 + $0x370] sm:$0xff]  ;;  %v339_v6 = vld [vmem:[#allocation5 + $0x378] sm:$0xff] }
  0x49   : > { %413 = vmatpush.msra.mxu1 %v269_v45  ;;  %385 = vmatpush.msra.mxu0 %v260_v48  ;;  %v352_v7 = vld [vmem:[#allocation5 + $0x3e0] sm:$0xff]  ;;  %v353_v8 = vld [vmem:[#allocation5 + $0x3e8] sm:$0xff]  ;;  %v330_v9 = vld [vmem:[#allocation5 + $0x330] sm:$0xff] }
  0x4a   : > { %444 = vmatpush.msra.mxu2 %v254_v46  ;;  %473 = vmatpush.msra.mxu3 %v255_v47  ;;  %v331_v10 = vld [vmem:[#allocation5 + $0x338] sm:$0xff]  ;;  %v1245_v11 = vld [vmem:[%s1227_s30 + $0x8] sm:$0xff]  ;;  %v344_v12 = vld [vmem:[#allocation5 + $0x3a0] sm:$0xff] }
  0x4b   : > { %414 = vmatpush.msra.mxu1 %v261_v49  ;;  %386 = vmatpush.msra.mxu0 %v252_v52  ;;  %v345_v13 = vld [vmem:[#allocation5 + $0x3a8] sm:$0xff]  ;;  %v322_v14 = vld [vmem:[#allocation5 + $0x2f0] sm:$0xff]  ;;  %v323_v15 = vld [vmem:[#allocation5 + $0x2f8] sm:$0xff] }
  0x4c   : > { %445 = vmatpush.msra.mxu2 %v246_v50  ;;  %474 = vmatpush.msra.mxu3 %v247_v51  ;;  %v336_v16 = vld [vmem:[#allocation5 + $0x360] sm:$0xff]  ;;  %v337_v17 = vld [vmem:[#allocation5 + $0x368] sm:$0xff]  ;;  %v314_v18 = vld [vmem:[#allocation5 + $0x2b0] sm:$0xff] }
  0x4d   : > { %415 = vmatpush.msra.mxu1 %v253_v53  ;;  %387 = vmatpush.msra.mxu0 %v244_v56  ;;  %v315_v19 = vld [vmem:[#allocation5 + $0x2b8] sm:$0xff]  ;;  %v328_v20 = vld [vmem:[#allocation5 + $0x320] sm:$0xff]  ;;  %v329_v21 = vld [vmem:[#allocation5 + $0x328] sm:$0xff] }
  0x4e   : > { %446 = vmatpush.msra.mxu2 %v238_v54  ;;  %475 = vmatpush.msra.mxu3 %v239_v55  ;;  %v306_v22 = vld [vmem:[#allocation5 + $0x270] sm:$0xff]  ;;  %v307_v23 = vld [vmem:[#allocation5 + $0x278] sm:$0xff]  ;;  %v320_v24 = vld [vmem:[#allocation5 + $0x2e0] sm:$0xff] }
  0x4f   : > { %416 = vmatpush.msra.mxu1 %v245_v57  ;;  %388 = vmatpush.msra.mxu0 %v236_v63  ;;  %v321_v25 = vld [vmem:[#allocation5 + $0x2e8] sm:$0xff]  ;;  %v298_v26 = vld [vmem:[#allocation5 + $0x230] sm:$0xff]  ;;  %v299_v27 = vld [vmem:[#allocation5 + $0x238] sm:$0xff] }
  0x50   : > { %447 = vmatpush.msra.mxu2 %v230_v58  ;;  %476 = vmatpush.msra.mxu3 %v231_v59  ;;  %v1252_v28 = vld [vmem:[%s1227_s30 + $0x10] sm:$0xff]  ;;  %v312_v29 = vld [vmem:[#allocation5 + $0x2a0] sm:$0xff]  ;;  %v313_v30 = vld [vmem:[#allocation5 + $0x2a8] sm:$0xff] }
  0x51   : > { %448 = vmatmul.f32.vlgmr.msra.gmra.mxu2 %v1238_v60  ;;  %477 = vmatmul.f32.vlgmr.msra.gmra.mxu3 %v1238_v60  ;;  %v290_v31 = vld [vmem:[#allocation5 + $0x1f0] sm:$0xff]  ;;  %v291_v32 = vld [vmem:[#allocation5 + $0x1f8] sm:$0xff]  ;;  %v304_v33 = vld [vmem:[#allocation5 + $0x260] sm:$0xff] }
  0x52   : > { %548 = vmatpush.msrb.mxu2 %v354_v61  ;;  %577 = vmatpush.msrb.mxu3 %v355_v62  ;;  %v305_v34 = vld [vmem:[#allocation5 + $0x268] sm:$0xff]  ;;  %v282_v35 = vld [vmem:[#allocation5 + $0x1b0] sm:$0xff]  ;;  %v283_v36 = vld [vmem:[#allocation5 + $0x1b8] sm:$0xff] }
  0x53   : > { %417 = vmatpush.msra.mxu1 %v237_v0  ;;  %389 = vmatpush.msra.mxu0 %v228_v3  ;;  %v296_v37 = vld [vmem:[#allocation5 + $0x220] sm:$0xff]  ;;  %v297_v38 = vld [vmem:[#allocation5 + $0x228] sm:$0xff]  ;;  %v274_v39 = vld [vmem:[#allocation5 + $0x170] sm:$0xff] }
  0x54   : > { %549 = vmatpush.msrb.mxu2 %v346_v1  ;;  %578 = vmatpush.msrb.mxu3 %v347_v2  ;;  %v275_v40 = vld [vmem:[#allocation5 + $0x178] sm:$0xff]  ;;  %v288_v41 = vld [vmem:[#allocation5 + $0x1e0] sm:$0xff]  ;;  %v289_v42 = vld [vmem:[#allocation5 + $0x1e8] sm:$0xff] }
  0x55   : > { %418 = vmatpush.msra.mxu1 %v229_v4  ;;  %390 = vmatmul.f32.vlgmr.msra.gmra.mxu0 %v1238_v60  ;;  %v266_v43 = vld [vmem:[#allocation5 + $0x130] sm:$0xff]  ;;  %v267_v44 = vld [vmem:[#allocation5 + $0x138] sm:$0xff]  ;;  %v280_v46 = vld [vmem:[#allocation5 + $0x1a0] sm:$0xff] }
  0x56   : > { %550 = vmatpush.msrb.mxu2 %v338_v5  ;;  %579 = vmatpush.msrb.mxu3 %v339_v6  ;;  %v1259_v45 = vld [vmem:[%s1227_s30 + $0x18] sm:$0xff]  ;;  %v281_v47 = vld [vmem:[#allocation5 + $0x1a8] sm:$0xff]  ;;  %v258_v48 = vld [vmem:[#allocation5 + $0xf0] sm:$0xff] }
  0x57   : > { %419 = vmatmul.f32.vlgmr.msra.gmra.mxu1 %v1238_v60  ;;  %490 = vmatpush.msrb.mxu0 %v352_v7  ;;  %v259_v49 = vld [vmem:[#allocation5 + $0xf8] sm:$0xff]  ;;  %v272_v50 = vld [vmem:[#allocation5 + $0x160] sm:$0xff]  ;;  %v273_v51 = vld [vmem:[#allocation5 + $0x168] sm:$0xff] }
  0x58   : > { %519 = vmatpush.msrb.mxu1 %v353_v8  ;;  %551 = vmatpush.msrb.mxu2 %v330_v9  ;;  %v250_v52 = vld [vmem:[#allocation5 + $0xb0] sm:$0xff]  ;;  %v251_v53 = vld [vmem:[#allocation5 + $0xb8] sm:$0xff]  ;;  %v264_v54 = vld [vmem:[#allocation5 + $0x120] sm:$0xff] }
  0x59   : > { %580 = vmatpush.msrb.mxu3 %v331_v10  ;;  %451 = vmatmul.f32.gmra.mxu2 %v1245_v11  ;;  %v265_v55 = vld [vmem:[#allocation5 + $0x128] sm:$0xff]  ;;  %v242_v56 = vld [vmem:[#allocation5 + $0x70] sm:$0xff]  ;;  %v243_v57 = vld [vmem:[#allocation5 + $0x78] sm:$0xff] }
  0x5a   : > { %480 = vmatmul.f32.gmra.mxu3 %v1245_v11  ;;  %491 = vmatpush.msrb.mxu0 %v344_v12  ;;  %v256_v58 = vld [vmem:[#allocation5 + $0xe0] sm:$0xff]  ;;  %v257_v59 = vld [vmem:[#allocation5 + $0xe8] sm:$0xff]  ;;  %v234_v61 = vld [vmem:[#allocation5 + $0x30] sm:$0xff] }
  0x5b   : > { %520 = vmatpush.msrb.mxu1 %v345_v13  ;;  %552 = vmatpush.msrb.mxu2 %v322_v14  ;;  %v235_v62 = vld [vmem:[#allocation5 + $0x38] sm:$0xff]  ;;  %v248_v63 = vld [vmem:[#allocation5 + $0xa0] sm:$0xff]  ;;  %v249_v0 = vld [vmem:[#allocation5 + $0xa8] sm:$0xff] }
  0x5c   : > { %581 = vmatpush.msrb.mxu3 %v323_v15  ;;  %492 = vmatpush.msrb.mxu0 %v336_v16  ;;  %v240_v1 = vld [vmem:[#allocation5 + $0x60] sm:$0xff]  ;;  %v241_v2 = vld [vmem:[#allocation5 + $0x68] sm:$0xff] }
  0x5d   : > { %521 = vmatpush.msrb.mxu1 %v337_v17  ;;  %553 = vmatpush.msrb.mxu2 %v314_v18  ;;  %v232_v3 = vld [vmem:[#allocation5 + $0x20] sm:$0xff]  ;;  %v233_v4 = vld [vmem:[#allocation5 + $0x28] sm:$0xff] }
  0x5e   : > { %582 = vmatpush.msrb.mxu3 %v315_v19  ;;  %493 = vmatpush.msrb.mxu0 %v328_v20 }
  0x5f   : > { %522 = vmatpush.msrb.mxu1 %v329_v21  ;;  %554 = vmatpush.msrb.mxu2 %v306_v22 }
  0x60   : > { %583 = vmatpush.msrb.mxu3 %v307_v23  ;;  %393 = vmatmul.f32.gmra.mxu0 %v1245_v11 }
  0x61   : > { %422 = vmatmul.f32.gmra.mxu1 %v1245_v11  ;;  %494 = vmatpush.msrb.mxu0 %v320_v24 }
  0x62   : > { %523 = vmatpush.msrb.mxu1 %v321_v25  ;;  %555 = vmatpush.msrb.mxu2 %v298_v26 }
  0x63   : > { %584 = vmatpush.msrb.mxu3 %v299_v27  ;;  %454 = vmatmul.f32.gmra.mxu2 %v1252_v28 }
  0x64   : > { %483 = vmatmul.f32.gmra.mxu3 %v1252_v28  ;;  %495 = vmatpush.msrb.mxu0 %v312_v29 }
  0x65   : > { %524 = vmatpush.msrb.mxu1 %v313_v30  ;;  %556 = vmatpush.msrb.mxu2 %v290_v31 }
  0x66   : > { %585 = vmatpush.msrb.mxu3 %v291_v32  ;;  %496 = vmatpush.msrb.mxu0 %v304_v33 }
  0x67   : > { %525 = vmatpush.msrb.mxu1 %v305_v34  ;;  %557 = vmatpush.msrb.mxu2 %v282_v35 }
  0x68   : > { %586 = vmatpush.msrb.mxu3 %v283_v36  ;;  %497 = vmatpush.msrb.mxu0 %v296_v37 }
  0x69   : > { %526 = vmatpush.msrb.mxu1 %v297_v38  ;;  %558 = vmatpush.msrb.mxu2 %v274_v39 }
  0x6a   : > { %587 = vmatpush.msrb.mxu3 %v275_v40  ;;  %396 = vmatmul.f32.gmra.mxu0 %v1252_v28 }
  0x6b   : > { %425 = vmatmul.f32.gmra.mxu1 %v1252_v28  ;;  %498 = vmatpush.msrb.mxu0 %v288_v41 }
  0x6c   : > { %527 = vmatpush.msrb.mxu1 %v289_v42  ;;  %559 = vmatpush.msrb.mxu2 %v266_v43 }
  0x6d   : > { %588 = vmatpush.msrb.mxu3 %v267_v44  ;;  %457 = vmatmul.f32.gmra.mxu2 %v1259_v45 }
  0x6e   : > { %486 = vmatmul.f32.gmra.mxu3 %v1259_v45  ;;  %499 = vmatpush.msrb.mxu0 %v280_v46 }
  0x6f   : > { %528 = vmatpush.msrb.mxu1 %v281_v47  ;;  %560 = vmatpush.msrb.mxu2 %v258_v48 }
  0x70   : > { %589 = vmatpush.msrb.mxu3 %v259_v49  ;;  %500 = vmatpush.msrb.mxu0 %v272_v50 }
  0x71   : > { %529 = vmatpush.msrb.mxu1 %v273_v51  ;;  %561 = vmatpush.msrb.mxu2 %v250_v52 }
  0x72   : > { %590 = vmatpush.msrb.mxu3 %v251_v53  ;;  %501 = vmatpush.msrb.mxu0 %v264_v54 }
  0x73   : > { %530 = vmatpush.msrb.mxu1 %v265_v55  ;;  %562 = vmatpush.msrb.mxu2 %v242_v56 }
  0x74   : > { %591 = vmatpush.msrb.mxu3 %v243_v57  ;;  %399 = vmatmul.f32.gmra.mxu0 %v1259_v45 }
  0x75   : > { %428 = vmatmul.f32.gmra.mxu1 %v1259_v45  ;;  %502 = vmatpush.msrb.mxu0 %v256_v58 }
  0x76   : > { %531 = vmatpush.msrb.mxu1 %v257_v59  ;;  %563 = vmatpush.msrb.mxu2 %v234_v61 }
  0x77   : > { %592 = vmatpush.msrb.mxu3 %v235_v62  ;;  %503 = vmatpush.msrb.mxu0 %v248_v63 }
  0x78   : > { %532 = vmatpush.msrb.mxu1 %v249_v0  ;;  %564 = vmatmul.f32.vlgmr.msrb.gmra.mxu2 %v1238_v60 }
  0x79   : > { %593 = vmatmul.f32.vlgmr.msrb.gmra.mxu3 %v1238_v60  ;;  %504 = vmatpush.msrb.mxu0 %v240_v1 }
  0x7a   : > { %533 = vmatpush.msrb.mxu1 %v241_v2 }
  0x7b   : > { %505 = vmatpush.msrb.mxu0 %v232_v3 }
  0x7c   : > { %534 = vmatpush.msrb.mxu1 %v233_v4  ;;  %506 = vmatmul.f32.vlgmr.msrb.gmra.mxu0 %v1238_v60 }
  0x7d   : > { %535 = vmatmul.f32.vlgmr.msrb.gmra.mxu1 %v1238_v60  ;;  %v1281_v60 = vld [vmem:[#allocation7] sm:$0xff] }
  0x7e   : > { %v1284_v5 = vperm.slane %v1281_v60, 0  ;;  %v1287_v6 = vperm.slane %v1281_v60, 1  ;;  %v1290_v7 = vperm.slane %v1281_v60, 2  ;;  %v1293_v8 = vperm.slane %v1281_v60, 3 }
  0x7f   : > { %v1327_v53 = vperm.slane %v1281_v60, 4  ;;  %v1330_v54 = vperm.slane %v1281_v60, 5  ;;  %v1333_v55 = vperm.slane %v1281_v60, 6  ;;  %v1336_v56 = vperm.slane %v1281_v60, 7 }
  0x80   : > { %567 = vmatmul.f32.gmra.mxu2 %v1245_v11 }
  0x81   : > { %596 = vmatmul.f32.gmra.mxu3 %v1245_v11 }
  0x84   : > { %509 = vmatmul.f32.gmra.mxu0 %v1245_v11 }
  0x85   : > { %538 = vmatmul.f32.gmra.mxu1 %v1245_v11 }
  0x88   : > { %570 = vmatmul.f32.gmra.mxu2 %v1252_v28 }
  0x89   : > { %599 = vmatmul.f32.gmra.mxu3 %v1252_v28 }
  0x8c   : > { %512 = vmatmul.f32.gmra.mxu0 %v1252_v28 }
  0x8d   : > { %541 = vmatmul.f32.gmra.mxu1 %v1252_v28 }
  0x90   : > { %573 = vmatmul.f32.gmra.mxu2 %v1259_v45 }
  0x91   : > { %602 = vmatmul.f32.gmra.mxu3 %v1259_v45 }
  0x94   : > { %515 = vmatmul.f32.gmra.mxu0 %v1259_v45 }
  0x95   : > { %544 = vmatmul.f32.gmra.mxu1 %v1259_v45 }
  0xd2   : > { %v391_v9 = vpop.f32.mrf.mxu0 }
  0xd3   : > { %v392_v11 = vadd.f32 %v391_v9, %v1284_v5 }
  0xd4   : > { %v420_v10 = vpop.f32.mrf.mxu1  ;;  %v449_v13 = vpop.f32.mrf.mxu2 }
  0xd5   : > { %v421_v12 = vadd.f32 %v420_v10, %v1287_v6  ;;  %v478_v14 = vpop.f32.mrf.mxu3  ;;  %v450_v15 = vadd.f32 %v449_v13, %v1290_v7  ;;  %874 = vtanh.f32 %v392_v11 }
  0xd6   : > { %v479_v16 = vadd.f32 %v478_v14, %v1293_v8 }
  0xd7   : > { %876 = vtanh.f32 %v421_v12 }
  0xd8   : > { %878 = vtanh.f32 %v450_v15 }
  0xd9   : > { %880 = vtanh.f32 %v479_v16 }
  0xdb   : > { %v875_v17 = vpop.eup %874 }
  0xdc   : > { %v452_v18 = vpop.f32.mrf.mxu2  ;;  %638 = vst [vmem:[%s1300_s23] sm:$0xff] %v875_v17 }
  0xdd   : > { %v481_v19 = vpop.f32.mrf.mxu3  ;;  %v877_v20 = vpop.eup %876  ;;  %v453_v23 = vadd.f32 %v452_v18, %v1290_v7 }
  0xde   : > { %v394_v21 = vpop.f32.mrf.mxu0  ;;  %v423_v22 = vpop.f32.mrf.mxu1  ;;  %639 = vst [vmem:[%s1300_s23 + $0x8] sm:$0xff] %v877_v20  ;;  %v482_v27 = vadd.f32 %v481_v19, %v1293_v8 }
  0xdf   : > { %v879_v24 = vpop.eup %878  ;;  %v395_v25 = vadd.f32 %v394_v21, %v1284_v5  ;;  %v424_v26 = vadd.f32 %v423_v22, %v1287_v6  ;;  %882 = vtanh.f32 %v453_v23 }
  0xe0   : > { %v881_v28 = vpop.eup %880  ;;  %640 = vst [vmem:[%s1300_s23 + $0x10] sm:$0xff] %v879_v24 }
  0xe1   : > { %641 = vst [vmem:[%s1300_s23 + $0x18] sm:$0xff] %v881_v28  ;;  %884 = vtanh.f32 %v395_v25 }
  0xe2   : > { %886 = vtanh.f32 %v424_v26 }
  0xe3   : > { %888 = vtanh.f32 %v482_v27 }
  0xe5   : > { %v883_v29 = vpop.eup %882 }
  0xe6   : > { %648 = vst [vmem:[%s1300_s23 + $0x50] sm:$0xff] %v883_v29  ;;  %v455_v31 = vpop.f32.mrf.mxu2 }
  0xe7   : > { %v885_v30 = vpop.eup %884  ;;  %v484_v32 = vpop.f32.mrf.mxu3  ;;  %v456_v36 = vadd.f32 %v455_v31, %v1290_v7 }
  0xe8   : > { %v887_v33 = vpop.eup %886  ;;  %646 = vst [vmem:[%s1300_s23 + $0x40] sm:$0xff] %v885_v30  ;;  %v397_v34 = vpop.f32.mrf.mxu0  ;;  %v485_v40 = vadd.f32 %v484_v32, %v1293_v8 }
  0xe9   : > { %v426_v35 = vpop.f32.mrf.mxu1  ;;  %v889_v37 = vpop.eup %888  ;;  %647 = vst [vmem:[%s1300_s23 + $0x48] sm:$0xff] %v887_v33  ;;  %v398_v38 = vadd.f32 %v397_v34, %v1284_v5  ;;  %890 = vtanh.f32 %v456_v36 }
  0xea   : > { %v427_v39 = vadd.f32 %v426_v35, %v1287_v6  ;;  %649 = vst [vmem:[%s1300_s23 + $0x58] sm:$0xff] %v889_v37 }
  0xeb   : > { %892 = vtanh.f32 %v398_v38 }
  0xec   : > { %894 = vtanh.f32 %v427_v39 }
  0xed   : > { %896 = vtanh.f32 %v485_v40 }
  0xef   : > { %v891_v41 = vpop.eup %890 }
  0xf0   : > { %656 = vst [vmem:[%s1300_s23 + $0x90] sm:$0xff] %v891_v41  ;;  %v458_v43 = vpop.f32.mrf.mxu2 }
  0xf1   : > { %v893_v42 = vpop.eup %892  ;;  %v487_v44 = vpop.f32.mrf.mxu3  ;;  %v459_v48 = vadd.f32 %v458_v43, %v1290_v7 }
  0xf2   : > { %v895_v45 = vpop.eup %894  ;;  %654 = vst [vmem:[%s1300_s23 + $0x80] sm:$0xff] %v893_v42  ;;  %v400_v46 = vpop.f32.mrf.mxu0  ;;  %v488_v52 = vadd.f32 %v487_v44, %v1293_v8 }
  0xf3   : > { %v429_v47 = vpop.f32.mrf.mxu1  ;;  %v897_v49 = vpop.eup %896  ;;  %655 = vst [vmem:[%s1300_s23 + $0x88] sm:$0xff] %v895_v45  ;;  %v401_v50 = vadd.f32 %v400_v46, %v1284_v5  ;;  %898 = vtanh.f32 %v459_v48 }
  0xf4   : > { %v430_v51 = vadd.f32 %v429_v47, %v1287_v6  ;;  %657 = vst [vmem:[%s1300_s23 + $0x98] sm:$0xff] %v897_v49 }
  0xf5   : > { %900 = vtanh.f32 %v401_v50 }
  0xf6   : > { %902 = vtanh.f32 %v430_v51 }
  0xf7   : > { %904 = vtanh.f32 %v488_v52 }
  0xf9   : > { %v899_v57 = vpop.eup %898 }
  0xfa   : > { %v507_v58 = vpop.f32.mrf.mxu0  ;;  %664 = vst [vmem:[%s1300_s23 + $0xd0] sm:$0xff] %v899_v57 }
  0xfb   : > { %v536_v59 = vpop.f32.mrf.mxu1  ;;  %v901_v61 = vpop.eup %900  ;;  %v508_v62 = vadd.f32 %v507_v58, %v1327_v53 }
  0xfc   : > { %v537_v63 = vadd.f32 %v536_v59, %v1330_v54  ;;  %v903_v0 = vpop.eup %902  ;;  %662 = vst [vmem:[%s1300_s23 + $0xc0] sm:$0xff] %v901_v61  ;;  %v565_v1 = vpop.f32.mrf.mxu2 }
  0xfd   : > { %v594_v2 = vpop.f32.mrf.mxu3  ;;  %v905_v3 = vpop.eup %904  ;;  %663 = vst [vmem:[%s1300_s23 + $0xc8] sm:$0xff] %v903_v0  ;;  %906 = vtanh.f32 %v508_v62  ;;  %v566_v4 = vadd.f32 %v565_v1, %v1333_v55 }
  0xfe   : > { %v595_v60 = vadd.f32 %v594_v2, %v1336_v56  ;;  %665 = vst [vmem:[%s1300_s23 + $0xd8] sm:$0xff] %v905_v3  ;;  %908 = vtanh.f32 %v537_v63 }
  0xff   : > { %910 = vtanh.f32 %v566_v4 }
 0x100   : > { %912 = vtanh.f32 %v595_v60 }
 0x102   : > { %v510_v5 = vpop.f32.mrf.mxu0 }
 0x103   : > { %v539_v6 = vpop.f32.mrf.mxu1  ;;  %v907_v7 = vpop.eup %906  ;;  %v511_v8 = vadd.f32 %v510_v5, %v1327_v53 }
 0x104   : > { %v540_v9 = vadd.f32 %v539_v6, %v1330_v54  ;;  %v909_v10 = vpop.eup %908  ;;  %642 = vst [vmem:[%s1300_s23 + $0x20] sm:$0xff] %v907_v7  ;;  %v568_v11 = vpop.f32.mrf.mxu2 }
 0x105   : > { %v597_v12 = vpop.f32.mrf.mxu3  ;;  %v911_v13 = vpop.eup %910  ;;  %643 = vst [vmem:[%s1300_s23 + $0x28] sm:$0xff] %v909_v10  ;;  %914 = vtanh.f32 %v511_v8  ;;  %v569_v14 = vadd.f32 %v568_v11, %v1333_v55 }
 0x106   : > { %v598_v15 = vadd.f32 %v597_v12, %v1336_v56  ;;  %v913_v16 = vpop.eup %912  ;;  %644 = vst [vmem:[%s1300_s23 + $0x30] sm:$0xff] %v911_v13  ;;  %916 = vtanh.f32 %v540_v9 }
 0x107   : > { %645 = vst [vmem:[%s1300_s23 + $0x38] sm:$0xff] %v913_v16  ;;  %918 = vtanh.f32 %v569_v14 }
 0x108   : > { %920 = vtanh.f32 %v598_v15 }
 0x10a   : > { %v513_v17 = vpop.f32.mrf.mxu0 }
 0x10b   : > { %v542_v18 = vpop.f32.mrf.mxu1  ;;  %v915_v19 = vpop.eup %914  ;;  %v514_v20 = vadd.f32 %v513_v17, %v1327_v53 }
 0x10c   : > { %v543_v21 = vadd.f32 %v542_v18, %v1330_v54  ;;  %v917_v22 = vpop.eup %916  ;;  %650 = vst [vmem:[%s1300_s23 + $0x60] sm:$0xff] %v915_v19  ;;  %v571_v23 = vpop.f32.mrf.mxu2 }
 0x10d   : > { %v600_v24 = vpop.f32.mrf.mxu3  ;;  %v919_v25 = vpop.eup %918  ;;  %651 = vst [vmem:[%s1300_s23 + $0x68] sm:$0xff] %v917_v22  ;;  %922 = vtanh.f32 %v514_v20  ;;  %v572_v26 = vadd.f32 %v571_v23, %v1333_v55 }
 0x10e   : > { %v601_v27 = vadd.f32 %v600_v24, %v1336_v56  ;;  %v921_v28 = vpop.eup %920  ;;  %652 = vst [vmem:[%s1300_s23 + $0x70] sm:$0xff] %v919_v25  ;;  %924 = vtanh.f32 %v543_v21 }
 0x10f   : > { %653 = vst [vmem:[%s1300_s23 + $0x78] sm:$0xff] %v921_v28  ;;  %926 = vtanh.f32 %v572_v26 }
 0x110   : > { %928 = vtanh.f32 %v601_v27 }
 0x112   : > { %v516_v29 = vpop.f32.mrf.mxu0 }
 0x113   : > { %v545_v30 = vpop.f32.mrf.mxu1  ;;  %v923_v31 = vpop.eup %922  ;;  %v517_v32 = vadd.f32 %v516_v29, %v1327_v53 }
 0x114   : > { %v546_v33 = vadd.f32 %v545_v30, %v1330_v54  ;;  %v925_v34 = vpop.eup %924  ;;  %658 = vst [vmem:[%s1300_s23 + $0xa0] sm:$0xff] %v923_v31  ;;  %v574_v35 = vpop.f32.mrf.mxu2 }
 0x115   : > { %v603_v36 = vpop.f32.mrf.mxu3  ;;  %v927_v37 = vpop.eup %926  ;;  %659 = vst [vmem:[%s1300_s23 + $0xa8] sm:$0xff] %v925_v34  ;;  %930 = vtanh.f32 %v517_v32  ;;  %v575_v38 = vadd.f32 %v574_v35, %v1333_v55 }
 0x116   : > { %v604_v39 = vadd.f32 %v603_v36, %v1336_v56  ;;  %v929_v40 = vpop.eup %928  ;;  %660 = vst [vmem:[%s1300_s23 + $0xb0] sm:$0xff] %v927_v37  ;;  %932 = vtanh.f32 %v546_v33 }
 0x117   : > { %661 = vst [vmem:[%s1300_s23 + $0xb8] sm:$0xff] %v929_v40  ;;  %934 = vtanh.f32 %v575_v38 }
 0x118   : > { %936 = vtanh.f32 %v604_v39 }
 0x11b   : > { %v931_v41 = vpop.eup %930 }
 0x11c   : > { %v933_v42 = vpop.eup %932  ;;  %666 = vst [vmem:[%s1300_s23 + $0xe0] sm:$0xff] %v931_v41 }
 0x11d   : > { %v935_v43 = vpop.eup %934  ;;  %667 = vst [vmem:[%s1300_s23 + $0xe8] sm:$0xff] %v933_v42 }
 0x11e   : > { %v937_v44 = vpop.eup %936  ;;  %668 = vst [vmem:[%s1300_s23 + $0xf0] sm:$0xff] %v935_v43 }
 0x11f   : > { %669 = vst [vmem:[%s1300_s23 + $0xf8] sm:$0xff] %v937_v44 }
 0x120   : > { %1055 = shalt.err (!%p1052_p10)
}
 0x121   : > { %s1106_s22 = smov 1024   ;;  %s1107_s25 = smov 64  }
 0x122   : > { %811 = dma.vmem_to_hbm [thread:$0]  (%p1193_p0), %s685_s29, 4096, %s687_s4, %s671_s5, %s1106_s22, %s1106_s22, %s1107_s25  }
 0x123 PF: > { %p833_p11 = scmp.ge.s32.totalorder %s1098_s15, 2  ;;  %s701_s30 = sand.u32 1, %s1086_s12  }
 0x124   : > { %s702_s18 = scalar_lea.sflag [#allocation4], %s701_s30 }
 0x125   : > { %p825_p12 = pnand %p833_p11, %p1163_p6 }
 0x127   : > { %p826_p13 = pneg %p825_p12 }
 0x129   : > { %1081 = dma.done.wait (%p826_p13), %s702_s18, 4096  }
 0x12a   : > { %1083 = vsyncadd (%p826_p13), %s702_s18, 4294963200  ;;  %p17_p3 = scmp.ge.s32.totalorder %s1183_s6, 6   ;;  %s1416_s12 = smov %s1090_s13 }
 0x12b   : > { %s1417_s13 = smov %s1094_s14  ;;  %s1418_s14 = smov %s1199_s10 }
 0x12c   : > { %s1419_s15 = smov %s1183_s6  ;;  %19 = sbr.rel (!%p17_p3) target bundleno = 6 (0x6), region = 85 }
 0x131   :  { %708 = vsyncpa [#allocation3], 1 }
 0x132   :  { %710 = vsyncpa [#allocation3 + $0x1], 1 }
 0x133   :  { %711 = vsyncpa [#allocation6], 1 }
 0x134   :  { %712 = vsyncpa [#allocation4], 1 }
 0x135   :  { %714 = vsyncpa [#allocation4 + $0x1], 1 }

</bundles_post_ra>
